<compile_context>
chip_gen: v5e
topology: v5e:2x2
jax: 0.10.0
libtpu: 0.0.40
codegen_flags: <defaults>
</compile_context>

<pallas_src>
import jax
import jax.numpy as jnp
from jax.experimental import pallas as pl
from jax.experimental.pallas import tpu as pltpu


def _round_up(n, m):
    return ((n + m - 1) // m) * m


def _cdiv(a, b):
    return -(-a // b)


def mlp_kernel(x_ref, w1_ref, b1_ref, w2_ref, b2_ref, w3_ref, b3_ref, o_ref):
    # fc1 + relu (bf16 operands, f32 accumulation, f32 bias add on lane-dense 128-wide h1)
    h1 = jnp.dot(x_ref[...], w1_ref[...], preferred_element_type=jnp.float32)
    h1 = jnp.maximum(h1 + b1_ref[...], 0.0)

    # fc2 + relu
    h2 = jnp.dot(h1.astype(w2_ref.dtype), w2_ref[...],
                 preferred_element_type=jnp.float32)
    h2 = jnp.maximum(h2 + b2_ref[...], 0.0)

    # fc3 + sigmoid; output block is the natural (tb, out_dim) width -> minimal HBM write
    h3 = jnp.dot(h2.astype(w3_ref.dtype), w3_ref[...],
                 preferred_element_type=jnp.float32)
    h3 = h3 + b3_ref[...]
    # Approximate reciprocal (EUP): ~1e-3 relative error, intentional; use approx=False
    # if a consumer needs f32-accurate sigmoid.
    o_ref[...] = pl.reciprocal(1.0 + jnp.exp(-h3), approx=True).astype(o_ref.dtype)


def _pick_tiling(batch, batch_tile):
    batch_tile = max(16, batch_tile)
    # Enough tiles that no tile exceeds batch_tile rows ...
    n_tiles = _cdiv(batch, batch_tile)
    # ... and at least 2 tiles when the batch is splittable, so v7x's two TensorCores
    # both get work (no-op on single-TC v5e/v6e).
    if batch >= 32:
        n_tiles = max(n_tiles, 2)
    # Tile size derived from the tile count -> padding bounded by <16 rows per tile.
    tb = _round_up(_cdiv(batch, n_tiles), 16)
    padded_batch = n_tiles * tb
    return tb, n_tiles, padded_batch


def mlp_forward(x, w1, b1, w2, b2, w3, b3, *, batch_tile=1024):
    batch, in_dim = x.shape
    hidden = w1.shape[1]
    out_dim = w3.shape[1]

    # bf16 operands for the MXU; biases stay f32.
    xb = x.astype(jnp.bfloat16)

    # Pad the hidden dimension to a multiple of 128 so h1/h2 are lane-dense. Padded
    # rows/cols/bias entries are exactly zero, so the math is unchanged
    # (ReLU(0 + 0) = 0 and zero weight rows contribute nothing downstream).
    hp = _round_up(hidden, 128)
    w1p = jnp.zeros((in_dim, hp), jnp.bfloat16).at[:, :hidden].set(w1.astype(jnp.bfloat16))
    b1p = jnp.zeros((1, hp), jnp.float32).at[:, :hidden].set(b1)
    w2p = jnp.zeros((hp, hp), jnp.bfloat16).at[:hidden, :hidden].set(w2.astype(jnp.bfloat16))
    b2p = jnp.zeros((1, hp), jnp.float32).at[:, :hidden].set(b2)
    w3p = jnp.zeros((hp, out_dim), jnp.bfloat16).at[:hidden, :].set(w3.astype(jnp.bfloat16))
    b3f = b3.astype(jnp.float32)                       # (1, out_dim)
    # NOTE: contraction dims (in_dim, hidden-as-K beyond hp) are deliberately not padded
    # further: each matmul is a single underfilled MXU pass and can never be the bottleneck.

    tb, n_tiles, padded_batch = _pick_tiling(batch, batch_tile)
    if padded_batch != batch:
        xb = jnp.zeros((padded_batch, in_dim), jnp.bfloat16).at[:batch].set(xb)

    grid = (n_tiles,)

    out = pl.pallas_call(
        mlp_kernel,
        out_shape=jax.ShapeDtypeStruct((padded_batch, out_dim), jnp.float32),
        grid_spec=pl.GridSpec(
            grid=grid,
            in_specs=[
                pl.BlockSpec((tb, in_dim), lambda i: (i, 0)),    # x: tiled over batch
                pl.BlockSpec(w1p.shape, lambda i: (0, 0)),       # weights/biases resident
                pl.BlockSpec(b1p.shape, lambda i: (0, 0)),
                pl.BlockSpec(w2p.shape, lambda i: (0, 0)),
                pl.BlockSpec(b2p.shape, lambda i: (0, 0)),
                pl.BlockSpec(w3p.shape, lambda i: (0, 0)),
                pl.BlockSpec(b3f.shape, lambda i: (0, 0)),
            ],
            # Natural-width output block: block last-dim == full array last-dim (allowed),
            # so the HBM writeback only carries real data.
            out_specs=pl.BlockSpec((tb, out_dim), lambda i: (i, 0)),
        ),
        compiler_params=pltpu.CompilerParams(
            dimension_semantics=("parallel",),   # shards batch grid across v7x's 2 TCs
        ),
    )(xb, w1p, b1p, w2p, b2p, w3p, b3f)

    return out[:batch]


def init_params(key, input_size, hidden_size, output_size):
    """Deterministic init mimicking nn.Linear's uniform(-1/sqrt(fan_in), 1/sqrt(fan_in)).
    Weights returned already transposed to [in, out] for the kernel."""
    ks = jax.random.split(key, 6)

    def linear(kw, kb, fan_in, fan_out):
        bound = 1.0 / jnp.sqrt(fan_in)
        w = jax.random.uniform(kw, (fan_in, fan_out), jnp.float32, -bound, bound)
        b = jax.random.uniform(kb, (1, fan_out), jnp.float32, -bound, bound)
        return w, b

    w1, b1 = linear(ks[0], ks[1], input_size, hidden_size)
    w2, b2 = linear(ks[2], ks[3], hidden_size, hidden_size)
    w3, b3 = linear(ks[4], ks[5], hidden_size, output_size)
    return w1, b1, w2, b2, w3, b3


if __name__ == "__main__":
    input_size, hidden_size, output_size = 32, 64, 16
    batch = 8

    key = jax.random.PRNGKey(0)
    kx, kp = jax.random.split(key)
    x = jax.random.normal(kx, (batch, input_size), jnp.float32)
    params = init_params(kp, input_size, hidden_size, output_size)

    out = mlp_forward(x, *params)
    jax.block_until_ready(out)
    assert out.shape == (batch, output_size)

    w1, b1, w2, b2, w3, b3 = params

    # Reference with the same bf16 operand casts / f32 accumulation as the kernel.
    xb = x.astype(jnp.bfloat16)
    w1b, w2b, w3b = (w.astype(jnp.bfloat16) for w in (w1, w2, w3))
    h1 = jnp.maximum(jnp.dot(xb, w1b, preferred_element_type=jnp.float32) + b1, 0.0)
    h2 = jnp.maximum(
        jnp.dot(h1.astype(jnp.bfloat16), w2b, preferred_element_type=jnp.float32) + b2, 0.0)
    ref_bf16 = jax.nn.sigmoid(
        jnp.dot(h2.astype(jnp.bfloat16), w3b, preferred_element_type=jnp.float32) + b3)
    assert jnp.allclose(out, ref_bf16, atol=5e-3, rtol=5e-3)

    # Loose sanity check against the full-f32 PyTorch-equivalent forward.
    ref_f32 = jax.nn.sigmoid(
        jnp.maximum(jnp.maximum(x @ w1 + b1, 0.0) @ w2 + b2, 0.0) @ w3 + b3)
    assert jnp.allclose(out, ref_f32, atol=3e-2, rtol=3e-2)

    print("KERNEL_OK")
</pallas_src>

<mosaic_0001>
module attributes {stable_mosaic.version = 11 : i64} {
  func.func @mlp_kernel(%arg0: i32, %arg1: memref<16x32xbf16, #tpu.memory_space<vmem>>, %arg2: memref<32x128xbf16, #tpu.memory_space<vmem>>, %arg3: memref<1x128xf32, #tpu.memory_space<vmem>>, %arg4: memref<128x128xbf16, #tpu.memory_space<vmem>>, %arg5: memref<1x128xf32, #tpu.memory_space<vmem>>, %arg6: memref<128x16xbf16, #tpu.memory_space<vmem>>, %arg7: memref<1x16xf32, #tpu.memory_space<vmem>>, %arg8: memref<16x16xf32, #tpu.memory_space<vmem>>) attributes {dimension_semantics = [#tpu.dimension_semantics<parallel>], iteration_bounds = array<i64: 1>, scalar_prefetch = 0 : i64, scratch_operands = 0 : i64, tpu.core_type = #tpu.core_type<tc>, window_params = [{transform_indices = @transform_0, window_bounds = array<i64: 16, 32>}, {pipeline_mode = #tpu.pipeline_mode<synchronous>, transform_indices = @transform_1, window_bounds = array<i64: 32, 128>}, {pipeline_mode = #tpu.pipeline_mode<synchronous>, transform_indices = @transform_2, window_bounds = array<i64: 1, 128>}, {pipeline_mode = #tpu.pipeline_mode<synchronous>, transform_indices = @transform_3, window_bounds = array<i64: 128, 128>}, {pipeline_mode = #tpu.pipeline_mode<synchronous>, transform_indices = @transform_4, window_bounds = array<i64: 1, 128>}, {pipeline_mode = #tpu.pipeline_mode<synchronous>, transform_indices = @transform_5, window_bounds = array<i64: 128, 16>}, {pipeline_mode = #tpu.pipeline_mode<synchronous>, transform_indices = @transform_6, window_bounds = array<i64: 1, 16>}, {transform_indices = @transform_7, window_bounds = array<i64: 16, 16>}]} {
    %c0 = arith.constant 0 : index
    %c0_0 = arith.constant 0 : index
    %0 = vector.load %arg1[%c0, %c0_0] : memref<16x32xbf16, #tpu.memory_space<vmem>>, vector<16x32xbf16>
    %c0_1 = arith.constant 0 : index
    %c0_2 = arith.constant 0 : index
    %1 = vector.load %arg2[%c0_1, %c0_2] : memref<32x128xbf16, #tpu.memory_space<vmem>>, vector<32x128xbf16>
    %cst = arith.constant dense<0.000000e+00> : vector<16x128xf32>
    %2 = tpu.matmul %0, %1, %cst {dimension_numbers = #tpu.dot_dimension_numbers<[1], [0], [0], [1], [0, 0, 1, 1], [], []>} : vector<16x32xbf16>, vector<32x128xbf16>, vector<16x128xf32> -> vector<16x128xf32>
    %c0_3 = arith.constant 0 : index
    %c0_4 = arith.constant 0 : index
    %3 = vector.load %arg3[%c0_3, %c0_4] : memref<1x128xf32, #tpu.memory_space<vmem>>, vector<1x128xf32>
    %4 = vector.broadcast %3 : vector<1x128xf32> to vector<16x128xf32>
    %5 = arith.addf %2, %4 : vector<16x128xf32>
    %cst_5 = arith.constant 0.000000e+00 : f32
    %6 = vector.broadcast %cst_5 : f32 to vector<16x128xf32>
    %7 = arith.maximumf %5, %6 : vector<16x128xf32>
    %8 = arith.truncf %7 : vector<16x128xf32> to vector<16x128xbf16>
    %c0_6 = arith.constant 0 : index
    %c0_7 = arith.constant 0 : index
    %9 = vector.load %arg4[%c0_6, %c0_7] : memref<128x128xbf16, #tpu.memory_space<vmem>>, vector<128x128xbf16>
    %cst_8 = arith.constant dense<0.000000e+00> : vector<16x128xf32>
    %10 = tpu.matmul %8, %9, %cst_8 {dimension_numbers = #tpu.dot_dimension_numbers<[1], [0], [0], [1], [0, 0, 1, 1], [], []>} : vector<16x128xbf16>, vector<128x128xbf16>, vector<16x128xf32> -> vector<16x128xf32>
    %c0_9 = arith.constant 0 : index
    %c0_10 = arith.constant 0 : index
    %11 = vector.load %arg5[%c0_9, %c0_10] : memref<1x128xf32, #tpu.memory_space<vmem>>, vector<1x128xf32>
    %12 = vector.broadcast %11 : vector<1x128xf32> to vector<16x128xf32>
    %13 = arith.addf %10, %12 : vector<16x128xf32>
    %cst_11 = arith.constant 0.000000e+00 : f32
    %14 = vector.broadcast %cst_11 : f32 to vector<16x128xf32>
    %15 = arith.maximumf %13, %14 : vector<16x128xf32>
    %16 = arith.truncf %15 : vector<16x128xf32> to vector<16x128xbf16>
    %c0_12 = arith.constant 0 : index
    %c0_13 = arith.constant 0 : index
    %17 = vector.load %arg6[%c0_12, %c0_13] : memref<128x16xbf16, #tpu.memory_space<vmem>>, vector<128x16xbf16>
    %cst_14 = arith.constant dense<0.000000e+00> : vector<16x16xf32>
    %18 = tpu.matmul %16, %17, %cst_14 {dimension_numbers = #tpu.dot_dimension_numbers<[1], [0], [0], [1], [0, 0, 1, 1], [], []>} : vector<16x128xbf16>, vector<128x16xbf16>, vector<16x16xf32> -> vector<16x16xf32>
    %c0_15 = arith.constant 0 : index
    %c0_16 = arith.constant 0 : index
    %19 = vector.load %arg7[%c0_15, %c0_16] : memref<1x16xf32, #tpu.memory_space<vmem>>, vector<1x16xf32>
    %20 = vector.broadcast %19 : vector<1x16xf32> to vector<16x16xf32>
    %21 = arith.addf %18, %20 : vector<16x16xf32>
    %cst_17 = arith.constant 0.000000e+00 : f32
    %22 = vector.broadcast %cst_17 : f32 to vector<16x16xf32>
    %23 = arith.subf %22, %21 : vector<16x16xf32>
    %24 = math.exp %23 : vector<16x16xf32>
    %cst_18 = arith.constant 1.000000e+00 : f32
    %25 = vector.broadcast %cst_18 : f32 to vector<16x16xf32>
    %26 = arith.addf %25, %24 : vector<16x16xf32>
    %27 = tpu.reciprocal %26 {approx = true} : vector<16x16xf32> -> vector<16x16xf32>
    %c0_19 = arith.constant 0 : index
    %c0_20 = arith.constant 0 : index
    %28 = vector.load %arg8[%c0_19, %c0_20] : memref<16x16xf32, #tpu.memory_space<vmem>>, vector<16x16xf32>
    tpu.vector_store %arg8[%c0_19, %c0_20], %27 {strides = array<i32>} : memref<16x16xf32, #tpu.memory_space<vmem>>, vector<16x16xf32>,
    return
  }
  func.func @transform_0(%arg0: i32) -> (i32, i32) {
    %c0_i32 = arith.constant 0 : i32
    %c0_i32_0 = arith.constant 0 : i32
    return %arg0, %c0_i32 : i32, i32
  }
  func.func @transform_1(%arg0: i32) -> (i32, i32) {
    %c0_i32 = arith.constant 0 : i32
    %c0_i32_0 = arith.constant 0 : i32
    %c0_i32_1 = arith.constant 0 : i32
    return %c0_i32, %c0_i32_0 : i32, i32
  }
  func.func @transform_2(%arg0: i32) -> (i32, i32) {
    %c0_i32 = arith.constant 0 : i32
    %c0_i32_0 = arith.constant 0 : i32
    %c0_i32_1 = arith.constant 0 : i32
    return %c0_i32, %c0_i32_0 : i32, i32
  }
  func.func @transform_3(%arg0: i32) -> (i32, i32) {
    %c0_i32 = arith.constant 0 : i32
    %c0_i32_0 = arith.constant 0 : i32
    %c0_i32_1 = arith.constant 0 : i32
    return %c0_i32, %c0_i32_0 : i32, i32
  }
  func.func @transform_4(%arg0: i32) -> (i32, i32) {
    %c0_i32 = arith.constant 0 : i32
    %c0_i32_0 = arith.constant 0 : i32
    %c0_i32_1 = arith.constant 0 : i32
    return %c0_i32, %c0_i32_0 : i32, i32
  }
  func.func @transform_5(%arg0: i32) -> (i32, i32) {
    %c0_i32 = arith.constant 0 : i32
    %c0_i32_0 = arith.constant 0 : i32
    %c0_i32_1 = arith.constant 0 : i32
    return %c0_i32, %c0_i32_0 : i32, i32
  }
  func.func @transform_6(%arg0: i32) -> (i32, i32) {
    %c0_i32 = arith.constant 0 : i32
    %c0_i32_0 = arith.constant 0 : i32
    %c0_i32_1 = arith.constant 0 : i32
    return %c0_i32, %c0_i32_0 : i32, i32
  }
  func.func @transform_7(%arg0: i32) -> (i32, i32) {
    %c0_i32 = arith.constant 0 : i32
    %c0_i32_0 = arith.constant 0 : i32
    return %arg0, %c0_i32 : i32, i32
  }
}

</mosaic_0001>

<bundles_post_ra>
// kernel: tpu_custom_call.1
= control target key start
LH: loop header
LB: loop body
LE: loop exit
PB: predicated region body
PF: predicated region fallthrough
CT: control target
= control target key end

     0   :  { %12 = vsyncpa [#allocation3], 0  ;;  %s568_s0 = inlined_call_operand.vmem [shape: bf16[16,32], index: 0, kind: input, shape index: {}]   ;;  %s569_s1 = inlined_call_operand.hbm [shape: bf16[32,128], index: 1, kind: input, shape index: {}]   ;;  %s570_s2 = inlined_call_operand.vmem [shape: f32[1,128], index: 2, kind: input, shape index: {}]   ;;  %s571_s3 = inlined_call_operand.vmem [shape: bf16[128,128], index: 3, kind: input, shape index: {}]   ;;  %s572_s4 = inlined_call_operand.vmem [shape: f32[1,128], index: 4, kind: input, shape index: {}]   ;;  %s573_s5 = inlined_call_operand.vmem [shape: bf16[128,16], index: 5, kind: input, shape index: {}]   ;;  %s574_s6 = inlined_call_operand.vmem [shape: f32[1,16], index: 6, kind: input, shape index: {}]   ;;  %s575_s7 = inlined_call_operand.hbm [shape: f32[16,16], index: 7, kind: output, shape index: {}]  }
   0x1   :  { %13 = vsyncpa [#allocation4], 0  ;;  %s20_s26 = sshll.u32 %s569_s1, 4  ;;  %s456_s27 = smov [#allocation2]   ;;  %s21_s26 = int_to_ptr.hbm [resolvable:$true] %s20_s26 }
   0x2   :  { %s22_s28 = sshll.u32 %s456_s27, 4  ;;  %s457_s29 = smov 64   ;;  %s23_s28 = int_to_ptr.vmem [resolvable:$true] %s22_s28 }
   0x3   :  { %s458_s30 = smov 4  }
   0x4   :  { %28 = dma.hbm_to_vmem [thread:$0]  %s21_s26, 256, %s23_s28, [#allocation3], %s457_s29, %s457_s29, %s458_s30  }
   0x5   :  { %452 = dma.done.wait [#allocation3], 256  }
   0x6   :  { %453 = vsyncadd [#allocation3], 4294967040  ;;  %v370_v0 = vld [vmem:[#allocation2 + $0x8] sm:$0xff]  ;;  %v378_v1 = vld [vmem:[%s571_s3 + $0x38] sm:$0xff]  ;;  %vm71_vm0 = vcmask 261120   ;;  %vm269_vm1 = vcmask 130048  }
   0x7   :  { %81 = vmatpush.bf16.msra.mxu0 %v370_v0  ;;  %v369_v2 = vld [vmem:[#allocation2] sm:$0xff]  ;;  %160 = vmatpush.bf16.msra.mxu1 %v378_v1  ;;  %v377_v3 = vld [vmem:[%s571_s3 + $0x30] sm:$0xff]  ;;  %v376_v5 = vld [vmem:[%s571_s3 + $0x28] sm:$0xff]  ;;  %s278_s20 = sshll.u32 %s575_s7, 4  ;;  %s460_s21 = smov 128   ;;  %s279_s20 = int_to_ptr.hbm [resolvable:$true] %s278_s20 }
   0x8   :  { %v368_v4 = vld [vmem:[%s568_s0] sm:$0xff]  ;;  %v374_v7 = vld [vmem:[%s571_s3 + $0x18] sm:$0xff]  ;;  %v373_v8 = vld [vmem:[%s571_s3 + $0x10] sm:$0xff]  ;;  %s461_s22 = smov 8  }
   0x9   :  { %v375_v6 = vld [vmem:[%s571_s3 + $0x20] sm:$0xff]  ;;  %v372_v9 = vld [vmem:[%s571_s3 + $0x8] sm:$0xff]  ;;  %v386_v11 = vld [vmem:[%s573_s5 + $0x38] sm:$0xff] }
   0xa   :  { %v371_v10 = vld [vmem:[%s571_s3] sm:$0xff]  ;;  %245 = vmatpush.bf16.msra.mxu2 %v386_v11  ;;  %v385_v12 = vld [vmem:[%s573_s5 + $0x30] sm:$0xff]  ;;  %v384_v13 = vld [vmem:[%s573_s5 + $0x28] sm:$0xff] }
   0xb   :  { %82 = vmatpush.bf16.msra.mxu0 %v369_v2  ;;  %161 = vmatpush.bf16.msra.mxu1 %v377_v3  ;;  %v383_v14 = vld [vmem:[%s573_s5 + $0x20] sm:$0xff]  ;;  %v382_v23 = vld [vmem:[%s573_s5 + $0x18] sm:$0xff]  ;;  %v381_v24 = vld [vmem:[%s573_s5 + $0x10] sm:$0xff] }
   0xc   :  { %v393_v16 = vld [vmem:[%s570_s2] ss:$0 sm:$0xff]  ;;  %v380_v25 = vld [vmem:[%s573_s5 + $0x8] sm:$0xff] }
   0xd   :  { %v379_v26 = vld [vmem:[%s573_s5] sm:$0xff] }
   0xe   :  { %303 = vmatmul.msk.bf16.vlgmr.msra.gmra.mxu0 %vm71_vm0, %v368_v4  ;;  %246 = vmatpush.bf16.msra.mxu2 %v385_v12  ;;  %v394_v28 = vld [vmem:[%s572_s4] ss:$0 sm:$0xff]  ;;  %s459_s4 = smov [#allocation5]  }
   0xf   :  { %162 = vmatpush.bf16.msra.mxu1 %v376_v5  ;;  %v395_v35 = vld [vmem:[%s574_s6] ss:$0 sm:$0xff]  ;;  %s276_s5 = sshll.u32 %s459_s4, 4  ;;  %s277_s5 = int_to_ptr.vmem [resolvable:$true] %s276_s5 }
  0x12   :  { %247 = vmatpush.bf16.msra.mxu2 %v384_v13 }
  0x13   :  { %163 = vmatpush.bf16.msra.mxu1 %v375_v6 }
  0x16   :  { %248 = vmatpush.bf16.msra.mxu2 %v383_v14 }
  0x17   :  { %164 = vmatpush.bf16.msra.mxu1 %v374_v7 }
  0x1a   :  { %249 = vmatpush.bf16.msra.mxu2 %v382_v23 }
  0x1b   :  { %165 = vmatpush.bf16.msra.mxu1 %v373_v8 }
  0x1e   :  { %250 = vmatpush.bf16.msra.mxu2 %v381_v24 }
  0x1f   :  { %166 = vmatpush.bf16.msra.mxu1 %v372_v9 }
  0x22   :  { %251 = vmatpush.bf16.msra.mxu2 %v380_v25 }
  0x23   :  { %167 = vmatpush.bf16.msra.mxu1 %v371_v10 }
  0x26   :  { %252 = vmatpush.bf16.msra.mxu2 %v379_v26 }
  0x8b   :  { %v84_v15 = vpop.f32.mrf.mxu0 }
  0x8c   :  { %v85_v17 = vadd.f32 %v393_v16, %v84_v15 }
  0x8e   :  { %v89_v20 = vmax.f32 %v85_v17, 0.0 }
  0x93   :  { %v86_v18 = vpop.f32.mrf.mxu0 }
  0x94   :  { %v87_v19 = vadd.f32 %v393_v16, %v86_v18 }
  0x96   :  { %v90_v21 = vmax.f32 %v87_v19, 0.0 }
  0x98   :  { %v91_v22 = vpack.c.bf16 %v90_v21, %v89_v20 }
  0x9a   :  { %168 = vmatmul.bf16.vlgmr.msra.gmra.mxu1 %v91_v22 }
 0x117   :  { %v169_v27 = vpop.f32.mrf.mxu1 }
 0x118   :  { %v170_v29 = vadd.f32 %v394_v28, %v169_v27 }
 0x11a   :  { %v174_v32 = vmax.f32 %v170_v29, 0.0 }
 0x11f   :  { %v171_v30 = vpop.f32.mrf.mxu1 }
 0x120   :  { %v172_v31 = vadd.f32 %v394_v28, %v171_v30 }
 0x122   :  { %v175_v33 = vmax.f32 %v172_v31, 0.0 }
 0x124   :  { %v176_v34 = vpack.c.bf16 %v175_v33, %v174_v32 }
 0x126   :  { %253 = vmatmul.bf16.vlgmr.msra.gmra.mxu2 %v176_v34 }
 0x1a9   :  { %v254_v36 = vpop.f32.mrf.mxu2 }
 0x1aa   :  { %v255_v37 = vadd.f32 %v395_v35, %v254_v36 }
 0x1ac   :  { %v259_v38 = vsub.f32 0.0, %v255_v37 }
 0x1ae   :  { %v261_v39 = vmul.f32 1.442695, %v259_v38 }
 0x1b0   :  { %396 = vpow2.f32 %v261_v39 }
 0x1b1   :  { %v256_v40 = vpop.f32.mrf.mxu2 }
 0x1b2   :  { %v257_v41 = vadd.f32 %v395_v35, %v256_v40 }
 0x1b4   :  { %v260_v42 = vsub.f32 0.0, %v257_v41 }
 0x1b6   :  { %v397_v43 = vpop.eup %396  ;;  %v263_v44 = vmul.f32 1.442695, %v260_v42 }
 0x1b7   :  { %v265_v45 = vadd.f32 1.0, %v397_v43 }
 0x1b8   :  { %398 = vpow2.f32 %v263_v44 }
 0x1b9   :  { %400 = vrcp.f32 %v265_v45 }
 0x1be   :  { %v399_v46 = vpop.eup %398 }
 0x1bf   :  { %v401_v47 = vpop.eup %400  ;;  %v266_v48 = vadd.f32 1.0, %v399_v46 }
 0x1c0   :  { %270 = vst.msk [vmem:[#allocation5] sm:$0xff] %vm269_vm1, %v401_v47 }
 0x1c1   :  { %402 = vrcp.f32 %v266_v48 }
 0x1c7   :  { %v403_v49 = vpop.eup %402 }
 0x1c8   :  { %271 = vst.msk [vmem:[#allocation5 + $0x8] sm:$0xff] %vm269_vm1, %v403_v49 }
 0x1c9   :  { %284 = dma.vmem_to_hbm [thread:$0]  %s277_s5, 256, %s279_s20, [#allocation4], %s460_s21, %s460_s21, %s461_s22  }
 0x1ca   :  { %454 = dma.done.wait [#allocation4], 256  }
 0x1cb   :  { %455 = vsyncadd [#allocation4], 4294967040 }
 0x1cc   :  { %289 = vsyncpa [#allocation3], 1 }
 0x1cd   :  { %290 = vsyncpa [#allocation4], 1 }

</bundles_post_ra>
